<compile_context>
chip_gen: v7x
topology: tpu7x:2x2x1
jax: 0.10.0
libtpu: 0.0.40
codegen_flags: <defaults>
</compile_context>

<pallas_src>
import functools

import jax
import jax.numpy as jnp
from jax import lax
from jax.experimental import pallas as pl
from jax.experimental.pallas import tpu as pltpu

EPS = 1e-3  # parity with the torch module (unused with default modes)

_LANE = 128
_UNROLL_MAX_KM1 = 16   # fully unroll the sample scan when K-1 <= this
_TM_CAP = 2048         # measured mem-bound roofline plateaus by ~1-2K lanes


def _out_rows(K, C):
    return C + (K - 1) + 4


# -----------------------------------------------------------------------------
# Kernel bodies
# -----------------------------------------------------------------------------
def _point_integrator_kernel_unrolled(colors_ref,   # VMEM [K*C, TM]
                                      dens_ref,     # VMEM [K, TM]
                                      radii_ref,    # VMEM [K, TM]
                                      out_ref,      # VMEM [ROWS, TM]
                                      *, K, C):
    """Fully-unrolled scan over the (small) sample axis."""
    Km1 = K - 1
    ROW_W = C
    ROW_RAD = C + Km1
    ROW_TEND = ROW_RAD + 1
    ROW_RMIN = ROW_TEND + 1
    ROW_RMAX = ROW_RMIN + 1

    tm = dens_ref.shape[1]
    t_run = jnp.ones((1, tm), jnp.float32)          # exclusive transmittance
    csum_color = jnp.zeros((C, tm), jnp.float32)
    csum_rad = jnp.zeros((1, tm), jnp.float32)
    wsum = jnp.zeros((1, tm), jnp.float32)
    rmin = None
    rmax = None

    # Per-row static ref slices (no whole-K intermediates -> bounded vreg use).
    c_prev = colors_ref[0:C, :]
    r_prev = radii_ref[0:1, :]
    d_prev = dens_ref[0:1, :]

    w_chunk = []                                    # batch weight stores by 4
    for j in range(Km1):
        c_next = colors_ref[(j + 1) * C:(j + 2) * C, :]
        r_next = radii_ref[j + 1:j + 2, :]
        d_next = dens_ref[j + 1:j + 2, :]

        delta = r_next - r_prev
        r_mid = (r_prev + r_next) * 0.5             # use_mid_point=True
        sigma = jnp.maximum((d_prev + d_next) * 0.5, 0.0)   # 'relu' clamp
        alpha = 1.0 - jnp.exp(-delta * sigma)

        w_j = alpha * t_run                         # weight_j = alpha_j * T_j
        w_chunk.append(w_j)
        if len(w_chunk) == 4 or j == Km1 - 1:
            start = j + 1 - len(w_chunk)
            out_ref[ROW_W + start:ROW_W + j + 1, :] = jnp.concatenate(
                w_chunk, axis=0)
            w_chunk = []

        csum_color = csum_color + w_j * ((c_prev + c_next) * 0.5)
        csum_rad = csum_rad + w_j * r_mid
        wsum = wsum + w_j
        rmin = r_mid if rmin is None else jnp.minimum(rmin, r_mid)
        rmax = r_mid if rmax is None else jnp.maximum(rmax, r_mid)

        if j == Km1 - 1:
            out_ref[ROW_TEND:ROW_TEND + 1, :] = t_run   # T[:, -1]
        t_run = t_run * (1.0 - alpha + 1e-10)
        c_prev, r_prev, d_prev = c_next, r_next, d_next

    # scale_color=True, normalize_color=False, use_white_background=False
    out_ref[0:C, :] = csum_color * 2.0 - 1.0

    # normalize_radial_dist=True (exact division; runs once per ray).
    comp_rad = csum_rad / wsum
    comp_rad = jnp.where(jnp.isnan(comp_rad), jnp.inf, comp_rad)
    out_ref[ROW_RAD:ROW_RAD + 1, :] = comp_rad
    out_ref[ROW_RMIN:ROW_RMIN + 1, :] = rmin
    out_ref[ROW_RMAX:ROW_RMAX + 1, :] = rmax


def _point_integrator_kernel_loop(colors_ref,   # VMEM [K*C, TM]
                                  dens_ref,     # VMEM [K, TM]
                                  radii_ref,    # VMEM [K, TM]
                                  out_ref,      # VMEM [ROWS, TM]
                                  *, K, C):
    """Large-K path: fori_loop scan, per-step pl.ds slices, no whole-K temps."""
    Km1 = K - 1
    ROW_W = C
    ROW_RAD = C + Km1
    ROW_TEND = ROW_RAD + 1
    ROW_RMIN = ROW_TEND + 1
    ROW_RMAX = ROW_RMIN + 1
    tm = dens_ref.shape[1]

    def body(j, carry):
        (t_run, t_used, csum_color, csum_rad, wsum, rmin, rmax,
         c_prev, r_prev, d_prev) = carry
        c_next = colors_ref[pl.ds((j + 1) * C, C), :]
        r_next = radii_ref[pl.ds(j + 1, 1), :]
        d_next = dens_ref[pl.ds(j + 1, 1), :]

        delta = r_next - r_prev
        r_mid = (r_prev + r_next) * 0.5
        sigma = jnp.maximum((d_prev + d_next) * 0.5, 0.0)
        alpha = 1.0 - jnp.exp(-delta * sigma)

        w = alpha * t_run
        out_ref[pl.ds(ROW_W + j, 1), :] = w

        csum_color = csum_color + w * ((c_prev + c_next) * 0.5)
        csum_rad = csum_rad + w * r_mid
        wsum = wsum + w
        rmin = jnp.minimum(rmin, r_mid)
        rmax = jnp.maximum(rmax, r_mid)

        t_used = t_run                    # T at this midpoint (exclusive)
        t_run = t_run * (1.0 - alpha + 1e-10)
        return (t_run, t_used, csum_color, csum_rad, wsum, rmin, rmax,
                c_next, r_next, d_next)

    init = (jnp.ones((1, tm), jnp.float32),
            jnp.ones((1, tm), jnp.float32),
            jnp.zeros((C, tm), jnp.float32),
            jnp.zeros((1, tm), jnp.float32),
            jnp.zeros((1, tm), jnp.float32),
            jnp.full((1, tm), jnp.inf, jnp.float32),
            jnp.full((1, tm), -jnp.inf, jnp.float32),
            colors_ref[0:C, :],
            radii_ref[0:1, :],
            dens_ref[0:1, :])

    (t_run, t_used, csum_color, csum_rad, wsum, rmin, rmax,
     _, _, _) = lax.fori_loop(0, Km1, body, init, unroll=4)

    out_ref[0:C, :] = csum_color * 2.0 - 1.0
    comp_rad = csum_rad / wsum
    comp_rad = jnp.where(jnp.isnan(comp_rad), jnp.inf, comp_rad)
    out_ref[ROW_RAD:ROW_RAD + 1, :] = comp_rad
    out_ref[ROW_TEND:ROW_TEND + 1, :] = t_used      # T[:, -1]
    out_ref[ROW_RMIN:ROW_RMIN + 1, :] = rmin
    out_ref[ROW_RMAX:ROW_RMAX + 1, :] = rmax


# -----------------------------------------------------------------------------
# Tiling / VMEM sizing
# -----------------------------------------------------------------------------
def _vmem_capacity_bytes():
    try:
        return int(pltpu.get_tpu_info().vmem_capacity_bytes)
    except Exception:
        return 64 * 1024 * 1024   # conservative v7x floor if the query fails


def _per_lane_bytes(K, C, rows):
    # double-buffered f32 bytes per ray-lane across all streams (in + out)
    return 2 * (K * C + 2 * K + rows) * 4


def _select_tm(M, K, C, rows, vmem_cap):
    budget = vmem_cap // 4                      # headroom for compiler scratch
    tm = (budget // _per_lane_bytes(K, C, rows)) // _LANE * _LANE
    tm = max(_LANE, min(_TM_CAP, tm))
    # Keep >= ~4 grid blocks when M allows so "parallel" semantics can shard
    # across v7x's two TensorCores (harmless on single-TC v5e/v6e).
    four_way = ((max(1, (M + 3) // 4) + _LANE - 1) // _LANE) * _LANE
    return min(tm, max(_LANE, four_way))


# -----------------------------------------------------------------------------
# pallas_call wrapper
# -----------------------------------------------------------------------------
def _integrate_packed(colors_kc, dens_km, radii_km, *, K, C, tm, vmem_limit):
    """Runs the kernel on producer-packed inputs.

    colors_kc: [K*C, Mpad] f32 (rays on lanes), dens_km/radii_km: [K, Mpad] f32.
    Returns the packed [C+(K-1)+4, Mpad] output slab.  Upstream producers that
    already emit this layout can call this directly and skip the transpose
    round-trip done by `point_integrator`.
    """
    rows = _out_rows(K, C)
    Mpad = colors_kc.shape[1]
    assert Mpad % tm == 0

    if K - 1 <= _UNROLL_MAX_KM1:
        kernel = functools.partial(_point_integrator_kernel_unrolled, K=K, C=C)
    else:
        kernel = functools.partial(_point_integrator_kernel_loop, K=K, C=C)

    grid_spec = pltpu.PrefetchScalarGridSpec(
        num_scalar_prefetch=0,
        grid=(Mpad // tm,),
        in_specs=[
            pl.BlockSpec((K * C, tm), lambda i: (0, i)),
            pl.BlockSpec((K, tm), lambda i: (0, i)),
            pl.BlockSpec((K, tm), lambda i: (0, i)),
        ],
        out_specs=pl.BlockSpec((rows, tm), lambda i: (0, i)),
    )
    # TODO(synk): if profiling still shows exposed DMA after the larger tiles,
    #             add pipeline_mode=pl.Buffered(3) on the colors in_spec.
    return pl.pallas_call(
        kernel,
        out_shape=jax.ShapeDtypeStruct((rows, Mpad), jnp.float32),
        grid_spec=grid_spec,
        compiler_params=pltpu.CompilerParams(
            dimension_semantics=("parallel",),
            vmem_limit_bytes=vmem_limit),
    )(colors_kc, dens_km, radii_km)


def point_integrator(colors, densities, radii, *, tm=None):
    """Pallas implementation of PointIntegrator.forward (default settings).

    Args:
      colors:    [N, R, K, C] float32
      densities: [N, R, K, 1] float32
      radii:     [N, R, K, 1] float32
      tm:        optional rays-per-block override (multiple of 128).
    Returns dict with composite_color [N,R,C], composite_radial_dist [N,R,1],
    weight [N,R,K-1,1], T_end [N,R,1].
    """
    N, R, K, C = colors.shape
    assert densities.shape == (N, R, K, 1)
    assert radii.shape == (N, R, K, 1)
    assert K >= 2, "PointIntegrator kernel requires K >= 2 samples per ray"
    M = N * R
    Km1 = K - 1
    rows = _out_rows(K, C)

    vmem_cap = _vmem_capacity_bytes()
    if tm is None:
        tm = _select_tm(M, K, C, rows, vmem_cap)
    assert tm % _LANE == 0
    footprint = _per_lane_bytes(K, C, rows) * tm
    vmem_limit = int(min(vmem_cap, max(32 * 1024 * 1024, 2 * footprint)))

    Mpad = pl.cdiv(M, tm) * tm

    # Layout plumbing: rays -> lanes, fused (K, C) -> sublanes.
    # TODO(synk): have upstream producers emit [K*C, M]/[K, M] directly (and
    #             call _integrate_packed) — each transpose here is an extra HBM
    #             round-trip over arrays the kernel then reads again.
    colors_t = jnp.transpose(colors.astype(jnp.float32).reshape(M, K, C),
                             (1, 2, 0)).reshape(K * C, M)
    dens_t = jnp.transpose(densities.astype(jnp.float32).reshape(M, K))
    radii_t = jnp.transpose(radii.astype(jnp.float32).reshape(M, K))
    if Mpad != M:
        pad = Mpad - M
        colors_t = jnp.pad(colors_t, ((0, 0), (0, pad)))
        dens_t = jnp.pad(dens_t, ((0, 0), (0, pad)))
        radii_t = jnp.pad(radii_t, ((0, 0), (0, pad)))

    out = _integrate_packed(colors_t, dens_t, radii_t,
                            K=K, C=C, tm=tm, vmem_limit=vmem_limit)

    # NOTE: slice off padded lanes BEFORE any global reduction / clip — padded
    # lanes intentionally carry wsum==0 -> inf radial dist and r_mid==0 in the
    # min/max rows.  Keep this ordering if refactoring.
    out = out[:, :M]

    comp_color = jnp.transpose(out[0:C, :]).reshape(N, R, C)
    weights = jnp.transpose(out[C:C + Km1, :]).reshape(N, R, Km1, 1)
    t_end = out[C + Km1 + 1, :].reshape(N, R, 1)

    # clip_radial_dist=True: global bounds from the per-ray min/max rows.
    rmin = jnp.min(out[C + Km1 + 2, :])
    rmax = jnp.max(out[C + Km1 + 3, :])
    comp_rad = jnp.clip(out[C + Km1, :], rmin, rmax).reshape(N, R, 1)

    return {
        "composite_color": comp_color,
        "composite_radial_dist": comp_rad,
        "weight": weights,
        "T_end": t_end,
    }


# -----------------------------------------------------------------------------
# Pure-JAX reference (mirrors the torch forward with default args)
# -----------------------------------------------------------------------------
def point_integrator_ref(colors, densities, radii):
    deltas = radii[:, :, 1:, :] - radii[:, :, :-1, :]
    colors_m = (colors[:, :, :-1, :] + colors[:, :, 1:, :]) * 0.5
    dens_m = (densities[:, :, :-1, :] + densities[:, :, 1:, :]) * 0.5
    radii_m = (radii[:, :, :-1, :] + radii[:, :, 1:, :]) * 0.5
    dens_m = jnp.maximum(dens_m, 0.0)
    alphas = 1.0 - jnp.exp(-deltas * dens_m)
    alphas_shifted = jnp.concatenate(
        [jnp.ones_like(alphas[:, :, :1, :]), 1.0 - alphas + 1e-10], axis=2)
    T = jnp.cumprod(alphas_shifted, axis=2)[:, :, :-1, :]
    weights = alphas * T
    weights_sum = weights.sum(axis=2)
    comp_color = jnp.sum(weights * colors_m, axis=2) * 2.0 - 1.0
    comp_rad = jnp.sum(weights * radii_m, axis=2) / weights_sum
    comp_rad = jnp.where(jnp.isnan(comp_rad), jnp.inf, comp_rad)
    comp_rad = jnp.clip(comp_rad, jnp.min(radii_m), jnp.max(radii_m))
    return {
        "composite_color": comp_color,
        "composite_radial_dist": comp_rad,
        "weight": weights,
        "T_end": T[:, :, -1, :],
    }


if __name__ == "__main__":
    def run_case(N, R, K, C, key):
        kc, kd, kr = jax.random.split(key, 3)
        colors = jax.random.uniform(kc, (N, R, K, C), dtype=jnp.float32)
        densities = jax.random.normal(kd, (N, R, K, 1), dtype=jnp.float32)
        radii = jnp.sort(
            jax.random.uniform(kr, (N, R, K, 1), dtype=jnp.float32,
                               minval=0.1, maxval=5.0), axis=2)
        out = point_integrator(colors, densities, radii)
        jax.block_until_ready(out)
        ref = point_integrator_ref(colors, densities, radii)
        for name in out:
            assert out[name].shape == ref[name].shape, name
            assert jnp.allclose(out[name], ref[name], rtol=1e-4, atol=1e-4), name

    key = jax.random.PRNGKey(0)
    k1, k2 = jax.random.split(key)
    run_case(2, 384, 8, 4, k1)    # small-K: fully-unrolled kernel path
    run_case(2, 320, 24, 4, k2)   # larger-K: fori_loop kernel path
    print("KERNEL_OK")
</pallas_src>

<mosaic_0001>
module attributes {stable_mosaic.version = 11 : i64} {
  func.func @_point_integrator_kernel_unrolled(%arg0: i32, %arg1: memref<32x256xf32, #tpu.memory_space<vmem>>, %arg2: memref<8x256xf32, #tpu.memory_space<vmem>>, %arg3: memref<8x256xf32, #tpu.memory_space<vmem>>, %arg4: memref<15x256xf32, #tpu.memory_space<vmem>>) attributes {dimension_semantics = [#tpu.dimension_semantics<parallel>], iteration_bounds = array<i64: 3>, scalar_prefetch = 0 : i64, scratch_operands = 0 : i64, tpu.core_type = #tpu.core_type<tc>, window_params = [{transform_indices = @transform_0, window_bounds = array<i64: 32, 256>}, {transform_indices = @transform_1, window_bounds = array<i64: 8, 256>}, {transform_indices = @transform_2, window_bounds = array<i64: 8, 256>}, {transform_indices = @transform_3, window_bounds = array<i64: 15, 256>}]} {
    %cst = arith.constant 1.000000e+00 : f32
    %0 = vector.broadcast %cst : f32 to vector<1x256xf32>
    %cst_0 = arith.constant 0.000000e+00 : f32
    %1 = vector.broadcast %cst_0 : f32 to vector<4x256xf32>
    %cst_1 = arith.constant 0.000000e+00 : f32
    %2 = vector.broadcast %cst_1 : f32 to vector<1x256xf32>
    %cst_2 = arith.constant 0.000000e+00 : f32
    %3 = vector.broadcast %cst_2 : f32 to vector<1x256xf32>
    %c0 = arith.constant 0 : index
    %c0_3 = arith.constant 0 : index
    %4 = vector.load %arg1[%c0, %c0_3] : memref<32x256xf32, #tpu.memory_space<vmem>>, vector<4x256xf32>
    %c0_4 = arith.constant 0 : index
    %c0_5 = arith.constant 0 : index
    %5 = vector.load %arg3[%c0_4, %c0_5] : memref<8x256xf32, #tpu.memory_space<vmem>>, vector<1x256xf32>
    %c0_6 = arith.constant 0 : index
    %c0_7 = arith.constant 0 : index
    %6 = vector.load %arg2[%c0_6, %c0_7] : memref<8x256xf32, #tpu.memory_space<vmem>>, vector<1x256xf32>
    %c4 = arith.constant 4 : index
    %c0_8 = arith.constant 0 : index
    %7 = vector.load %arg1[%c4, %c0_8] : memref<32x256xf32, #tpu.memory_space<vmem>>, vector<4x256xf32>
    %c1 = arith.constant 1 : index
    %c0_9 = arith.constant 0 : index
    %8 = vector.load %arg3[%c1, %c0_9] : memref<8x256xf32, #tpu.memory_space<vmem>>, vector<1x256xf32>
    %c1_10 = arith.constant 1 : index
    %c0_11 = arith.constant 0 : index
    %9 = vector.load %arg2[%c1_10, %c0_11] : memref<8x256xf32, #tpu.memory_space<vmem>>, vector<1x256xf32>
    %10 = arith.subf %8, %5 : vector<1x256xf32>
    %11 = arith.addf %5, %8 : vector<1x256xf32>
    %cst_12 = arith.constant 5.000000e-01 : f32
    %12 = vector.broadcast %cst_12 : f32 to vector<1x256xf32>
    %13 = arith.mulf %11, %12 : vector<1x256xf32>
    %14 = arith.addf %6, %9 : vector<1x256xf32>
    %cst_13 = arith.constant 5.000000e-01 : f32
    %15 = vector.broadcast %cst_13 : f32 to vector<1x256xf32>
    %16 = arith.mulf %14, %15 : vector<1x256xf32>
    %cst_14 = arith.constant 0.000000e+00 : f32
    %17 = vector.broadcast %cst_14 : f32 to vector<1x256xf32>
    %18 = arith.maximumf %16, %17 : vector<1x256xf32>
    %cst_15 = arith.constant 0.000000e+00 : f32
    %19 = vector.broadcast %cst_15 : f32 to vector<1x256xf32>
    %20 = arith.subf %19, %10 : vector<1x256xf32>
    %21 = arith.mulf %20, %18 : vector<1x256xf32>
    %22 = math.exp %21 : vector<1x256xf32>
    %cst_16 = arith.constant 1.000000e+00 : f32
    %23 = vector.broadcast %cst_16 : f32 to vector<1x256xf32>
    %24 = arith.subf %23, %22 : vector<1x256xf32>
    %25 = arith.mulf %24, %0 : vector<1x256xf32>
    %26 = arith.addf %4, %7 : vector<4x256xf32>
    %cst_17 = arith.constant 5.000000e-01 : f32
    %27 = vector.broadcast %cst_17 : f32 to vector<4x256xf32>
    %28 = arith.mulf %26, %27 : vector<4x256xf32>
    %29 = vector.broadcast %25 : vector<1x256xf32> to vector<4x256xf32>
    %30 = arith.mulf %29, %28 : vector<4x256xf32>
    %31 = arith.addf %1, %30 : vector<4x256xf32>
    %32 = arith.mulf %25, %13 : vector<1x256xf32>
    %33 = arith.addf %2, %32 : vector<1x256xf32>
    %34 = arith.addf %3, %25 : vector<1x256xf32>
    %cst_18 = arith.constant 1.000000e+00 : f32
    %35 = vector.broadcast %cst_18 : f32 to vector<1x256xf32>
    %36 = arith.subf %35, %24 : vector<1x256xf32>
    %cst_19 = arith.constant 1.000000e-10 : f32
    %37 = vector.broadcast %cst_19 : f32 to vector<1x256xf32>
    %38 = arith.addf %36, %37 : vector<1x256xf32>
    %39 = arith.mulf %0, %38 : vector<1x256xf32>
    %c8 = arith.constant 8 : index
    %c0_20 = arith.constant 0 : index
    %40 = vector.load %arg1[%c8, %c0_20] : memref<32x256xf32, #tpu.memory_space<vmem>>, vector<4x256xf32>
    %c2 = arith.constant 2 : index
    %c0_21 = arith.constant 0 : index
    %41 = vector.load %arg3[%c2, %c0_21] : memref<8x256xf32, #tpu.memory_space<vmem>>, vector<1x256xf32>
    %c2_22 = arith.constant 2 : index
    %c0_23 = arith.constant 0 : index
    %42 = vector.load %arg2[%c2_22, %c0_23] : memref<8x256xf32, #tpu.memory_space<vmem>>, vector<1x256xf32>
    %43 = arith.subf %41, %8 : vector<1x256xf32>
    %44 = arith.addf %8, %41 : vector<1x256xf32>
    %cst_24 = arith.constant 5.000000e-01 : f32
    %45 = vector.broadcast %cst_24 : f32 to vector<1x256xf32>
    %46 = arith.mulf %44, %45 : vector<1x256xf32>
    %47 = arith.addf %9, %42 : vector<1x256xf32>
    %cst_25 = arith.constant 5.000000e-01 : f32
    %48 = vector.broadcast %cst_25 : f32 to vector<1x256xf32>
    %49 = arith.mulf %47, %48 : vector<1x256xf32>
    %cst_26 = arith.constant 0.000000e+00 : f32
    %50 = vector.broadcast %cst_26 : f32 to vector<1x256xf32>
    %51 = arith.maximumf %49, %50 : vector<1x256xf32>
    %cst_27 = arith.constant 0.000000e+00 : f32
    %52 = vector.broadcast %cst_27 : f32 to vector<1x256xf32>
    %53 = arith.subf %52, %43 : vector<1x256xf32>
    %54 = arith.mulf %53, %51 : vector<1x256xf32>
    %55 = math.exp %54 : vector<1x256xf32>
    %cst_28 = arith.constant 1.000000e+00 : f32
    %56 = vector.broadcast %cst_28 : f32 to vector<1x256xf32>
    %57 = arith.subf %56, %55 : vector<1x256xf32>
    %58 = arith.mulf %57, %39 : vector<1x256xf32>
    %59 = arith.addf %7, %40 : vector<4x256xf32>
    %cst_29 = arith.constant 5.000000e-01 : f32
    %60 = vector.broadcast %cst_29 : f32 to vector<4x256xf32>
    %61 = arith.mulf %59, %60 : vector<4x256xf32>
    %62 = vector.broadcast %58 : vector<1x256xf32> to vector<4x256xf32>
    %63 = arith.mulf %62, %61 : vector<4x256xf32>
    %64 = arith.addf %31, %63 : vector<4x256xf32>
    %65 = arith.mulf %58, %46 : vector<1x256xf32>
    %66 = arith.addf %33, %65 : vector<1x256xf32>
    %67 = arith.addf %34, %58 : vector<1x256xf32>
    %68 = arith.minimumf %13, %46 : vector<1x256xf32>
    %69 = arith.maximumf %13, %46 : vector<1x256xf32>
    %cst_30 = arith.constant 1.000000e+00 : f32
    %70 = vector.broadcast %cst_30 : f32 to vector<1x256xf32>
    %71 = arith.subf %70, %57 : vector<1x256xf32>
    %cst_31 = arith.constant 1.000000e-10 : f32
    %72 = vector.broadcast %cst_31 : f32 to vector<1x256xf32>
    %73 = arith.addf %71, %72 : vector<1x256xf32>
    %74 = arith.mulf %39, %73 : vector<1x256xf32>
    %c12 = arith.constant 12 : index
    %c0_32 = arith.constant 0 : index
    %75 = vector.load %arg1[%c12, %c0_32] : memref<32x256xf32, #tpu.memory_space<vmem>>, vector<4x256xf32>
    %c3 = arith.constant 3 : index
    %c0_33 = arith.constant 0 : index
    %76 = vector.load %arg3[%c3, %c0_33] : memref<8x256xf32, #tpu.memory_space<vmem>>, vector<1x256xf32>
    %c3_34 = arith.constant 3 : index
    %c0_35 = arith.constant 0 : index
    %77 = vector.load %arg2[%c3_34, %c0_35] : memref<8x256xf32, #tpu.memory_space<vmem>>, vector<1x256xf32>
    %78 = arith.subf %76, %41 : vector<1x256xf32>
    %79 = arith.addf %41, %76 : vector<1x256xf32>
    %cst_36 = arith.constant 5.000000e-01 : f32
    %80 = vector.broadcast %cst_36 : f32 to vector<1x256xf32>
    %81 = arith.mulf %79, %80 : vector<1x256xf32>
    %82 = arith.addf %42, %77 : vector<1x256xf32>
    %cst_37 = arith.constant 5.000000e-01 : f32
    %83 = vector.broadcast %cst_37 : f32 to vector<1x256xf32>
    %84 = arith.mulf %82, %83 : vector<1x256xf32>
    %cst_38 = arith.constant 0.000000e+00 : f32
    %85 = vector.broadcast %cst_38 : f32 to vector<1x256xf32>
    %86 = arith.maximumf %84, %85 : vector<1x256xf32>
    %cst_39 = arith.constant 0.000000e+00 : f32
    %87 = vector.broadcast %cst_39 : f32 to vector<1x256xf32>
    %88 = arith.subf %87, %78 : vector<1x256xf32>
    %89 = arith.mulf %88, %86 : vector<1x256xf32>
    %90 = math.exp %89 : vector<1x256xf32>
    %cst_40 = arith.constant 1.000000e+00 : f32
    %91 = vector.broadcast %cst_40 : f32 to vector<1x256xf32>
    %92 = arith.subf %91, %90 : vector<1x256xf32>
    %93 = arith.mulf %92, %74 : vector<1x256xf32>
    %94 = arith.addf %40, %75 : vector<4x256xf32>
    %cst_41 = arith.constant 5.000000e-01 : f32
    %95 = vector.broadcast %cst_41 : f32 to vector<4x256xf32>
    %96 = arith.mulf %94, %95 : vector<4x256xf32>
    %97 = vector.broadcast %93 : vector<1x256xf32> to vector<4x256xf32>
    %98 = arith.mulf %97, %96 : vector<4x256xf32>
    %99 = arith.addf %64, %98 : vector<4x256xf32>
    %100 = arith.mulf %93, %81 : vector<1x256xf32>
    %101 = arith.addf %66, %100 : vector<1x256xf32>
    %102 = arith.addf %67, %93 : vector<1x256xf32>
    %103 = arith.minimumf %68, %81 : vector<1x256xf32>
    %104 = arith.maximumf %69, %81 : vector<1x256xf32>
    %cst_42 = arith.constant 1.000000e+00 : f32
    %105 = vector.broadcast %cst_42 : f32 to vector<1x256xf32>
    %106 = arith.subf %105, %92 : vector<1x256xf32>
    %cst_43 = arith.constant 1.000000e-10 : f32
    %107 = vector.broadcast %cst_43 : f32 to vector<1x256xf32>
    %108 = arith.addf %106, %107 : vector<1x256xf32>
    %109 = arith.mulf %74, %108 : vector<1x256xf32>
    %c16 = arith.constant 16 : index
    %c0_44 = arith.constant 0 : index
    %110 = vector.load %arg1[%c16, %c0_44] : memref<32x256xf32, #tpu.memory_space<vmem>>, vector<4x256xf32>
    %c4_45 = arith.constant 4 : index
    %c0_46 = arith.constant 0 : index
    %111 = vector.load %arg3[%c4_45, %c0_46] : memref<8x256xf32, #tpu.memory_space<vmem>>, vector<1x256xf32>
    %c4_47 = arith.constant 4 : index
    %c0_48 = arith.constant 0 : index
    %112 = vector.load %arg2[%c4_47, %c0_48] : memref<8x256xf32, #tpu.memory_space<vmem>>, vector<1x256xf32>
    %113 = arith.subf %111, %76 : vector<1x256xf32>
    %114 = arith.addf %76, %111 : vector<1x256xf32>
    %cst_49 = arith.constant 5.000000e-01 : f32
    %115 = vector.broadcast %cst_49 : f32 to vector<1x256xf32>
    %116 = arith.mulf %114, %115 : vector<1x256xf32>
    %117 = arith.addf %77, %112 : vector<1x256xf32>
    %cst_50 = arith.constant 5.000000e-01 : f32
    %118 = vector.broadcast %cst_50 : f32 to vector<1x256xf32>
    %119 = arith.mulf %117, %118 : vector<1x256xf32>
    %cst_51 = arith.constant 0.000000e+00 : f32
    %120 = vector.broadcast %cst_51 : f32 to vector<1x256xf32>
    %121 = arith.maximumf %119, %120 : vector<1x256xf32>
    %cst_52 = arith.constant 0.000000e+00 : f32
    %122 = vector.broadcast %cst_52 : f32 to vector<1x256xf32>
    %123 = arith.subf %122, %113 : vector<1x256xf32>
    %124 = arith.mulf %123, %121 : vector<1x256xf32>
    %125 = math.exp %124 : vector<1x256xf32>
    %cst_53 = arith.constant 1.000000e+00 : f32
    %126 = vector.broadcast %cst_53 : f32 to vector<1x256xf32>
    %127 = arith.subf %126, %125 : vector<1x256xf32>
    %128 = arith.mulf %127, %109 : vector<1x256xf32>
    %129 = tpu.concatenate %25, %58, %93, %128 in 0 : vector<1x256xf32>, vector<1x256xf32>, vector<1x256xf32>, vector<1x256xf32> -> vector<4x256xf32>
    %c4_54 = arith.constant 4 : index
    %c0_55 = arith.constant 0 : index
    %130 = vector.load %arg4[%c4_54, %c0_55] : memref<15x256xf32, #tpu.memory_space<vmem>>, vector<4x256xf32>
    tpu.vector_store %arg4[%c4_54, %c0_55], %129 {strides = array<i32>} : memref<15x256xf32, #tpu.memory_space<vmem>>, vector<4x256xf32>,
    %131 = arith.addf %75, %110 : vector<4x256xf32>
    %cst_56 = arith.constant 5.000000e-01 : f32
    %132 = vector.broadcast %cst_56 : f32 to vector<4x256xf32>
    %133 = arith.mulf %131, %132 : vector<4x256xf32>
    %134 = vector.broadcast %128 : vector<1x256xf32> to vector<4x256xf32>
    %135 = arith.mulf %134, %133 : vector<4x256xf32>
    %136 = arith.addf %99, %135 : vector<4x256xf32>
    %137 = arith.mulf %128, %116 : vector<1x256xf32>
    %138 = arith.addf %101, %137 : vector<1x256xf32>
    %139 = arith.addf %102, %128 : vector<1x256xf32>
    %140 = arith.minimumf %103, %116 : vector<1x256xf32>
    %141 = arith.maximumf %104, %116 : vector<1x256xf32>
    %cst_57 = arith.constant 1.000000e+00 : f32
    %142 = vector.broadcast %cst_57 : f32 to vector<1x256xf32>
    %143 = arith.subf %142, %127 : vector<1x256xf32>
    %cst_58 = arith.constant 1.000000e-10 : f32
    %144 = vector.broadcast %cst_58 : f32 to vector<1x256xf32>
    %145 = arith.addf %143, %144 : vector<1x256xf32>
    %146 = arith.mulf %109, %145 : vector<1x256xf32>
    %c20 = arith.constant 20 : index
    %c0_59 = arith.constant 0 : index
    %147 = vector.load %arg1[%c20, %c0_59] : memref<32x256xf32, #tpu.memory_space<vmem>>, vector<4x256xf32>
    %c5 = arith.constant 5 : index
    %c0_60 = arith.constant 0 : index
    %148 = vector.load %arg3[%c5, %c0_60] : memref<8x256xf32, #tpu.memory_space<vmem>>, vector<1x256xf32>
    %c5_61 = arith.constant 5 : index
    %c0_62 = arith.constant 0 : index
    %149 = vector.load %arg2[%c5_61, %c0_62] : memref<8x256xf32, #tpu.memory_space<vmem>>, vector<1x256xf32>
    %150 = arith.subf %148, %111 : vector<1x256xf32>
    %151 = arith.addf %111, %148 : vector<1x256xf32>
    %cst_63 = arith.constant 5.000000e-01 : f32
    %152 = vector.broadcast %cst_63 : f32 to vector<1x256xf32>
    %153 = arith.mulf %151, %152 : vector<1x256xf32>
    %154 = arith.addf %112, %149 : vector<1x256xf32>
    %cst_64 = arith.constant 5.000000e-01 : f32
    %155 = vector.broadcast %cst_64 : f32 to vector<1x256xf32>
    %156 = arith.mulf %154, %155 : vector<1x256xf32>
    %cst_65 = arith.constant 0.000000e+00 : f32
    %157 = vector.broadcast %cst_65 : f32 to vector<1x256xf32>
    %158 = arith.maximumf %156, %157 : vector<1x256xf32>
    %cst_66 = arith.constant 0.000000e+00 : f32
    %159 = vector.broadcast %cst_66 : f32 to vector<1x256xf32>
    %160 = arith.subf %159, %150 : vector<1x256xf32>
    %161 = arith.mulf %160, %158 : vector<1x256xf32>
    %162 = math.exp %161 : vector<1x256xf32>
    %cst_67 = arith.constant 1.000000e+00 : f32
    %163 = vector.broadcast %cst_67 : f32 to vector<1x256xf32>
    %164 = arith.subf %163, %162 : vector<1x256xf32>
    %165 = arith.mulf %164, %146 : vector<1x256xf32>
    %166 = arith.addf %110, %147 : vector<4x256xf32>
    %cst_68 = arith.constant 5.000000e-01 : f32
    %167 = vector.broadcast %cst_68 : f32 to vector<4x256xf32>
    %168 = arith.mulf %166, %167 : vector<4x256xf32>
    %169 = vector.broadcast %165 : vector<1x256xf32> to vector<4x256xf32>
    %170 = arith.mulf %169, %168 : vector<4x256xf32>
    %171 = arith.addf %136, %170 : vector<4x256xf32>
    %172 = arith.mulf %165, %153 : vector<1x256xf32>
    %173 = arith.addf %138, %172 : vector<1x256xf32>
    %174 = arith.addf %139, %165 : vector<1x256xf32>
    %175 = arith.minimumf %140, %153 : vector<1x256xf32>
    %176 = arith.maximumf %141, %153 : vector<1x256xf32>
    %cst_69 = arith.constant 1.000000e+00 : f32
    %177 = vector.broadcast %cst_69 : f32 to vector<1x256xf32>
    %178 = arith.subf %177, %164 : vector<1x256xf32>
    %cst_70 = arith.constant 1.000000e-10 : f32
    %179 = vector.broadcast %cst_70 : f32 to vector<1x256xf32>
    %180 = arith.addf %178, %179 : vector<1x256xf32>
    %181 = arith.mulf %146, %180 : vector<1x256xf32>
    %c24 = arith.constant 24 : index
    %c0_71 = arith.constant 0 : index
    %182 = vector.load %arg1[%c24, %c0_71] : memref<32x256xf32, #tpu.memory_space<vmem>>, vector<4x256xf32>
    %c6 = arith.constant 6 : index
    %c0_72 = arith.constant 0 : index
    %183 = vector.load %arg3[%c6, %c0_72] : memref<8x256xf32, #tpu.memory_space<vmem>>, vector<1x256xf32>
    %c6_73 = arith.constant 6 : index
    %c0_74 = arith.constant 0 : index
    %184 = vector.load %arg2[%c6_73, %c0_74] : memref<8x256xf32, #tpu.memory_space<vmem>>, vector<1x256xf32>
    %185 = arith.subf %183, %148 : vector<1x256xf32>
    %186 = arith.addf %148, %183 : vector<1x256xf32>
    %cst_75 = arith.constant 5.000000e-01 : f32
    %187 = vector.broadcast %cst_75 : f32 to vector<1x256xf32>
    %188 = arith.mulf %186, %187 : vector<1x256xf32>
    %189 = arith.addf %149, %184 : vector<1x256xf32>
    %cst_76 = arith.constant 5.000000e-01 : f32
    %190 = vector.broadcast %cst_76 : f32 to vector<1x256xf32>
    %191 = arith.mulf %189, %190 : vector<1x256xf32>
    %cst_77 = arith.constant 0.000000e+00 : f32
    %192 = vector.broadcast %cst_77 : f32 to vector<1x256xf32>
    %193 = arith.maximumf %191, %192 : vector<1x256xf32>
    %cst_78 = arith.constant 0.000000e+00 : f32
    %194 = vector.broadcast %cst_78 : f32 to vector<1x256xf32>
    %195 = arith.subf %194, %185 : vector<1x256xf32>
    %196 = arith.mulf %195, %193 : vector<1x256xf32>
    %197 = math.exp %196 : vector<1x256xf32>
    %cst_79 = arith.constant 1.000000e+00 : f32
    %198 = vector.broadcast %cst_79 : f32 to vector<1x256xf32>
    %199 = arith.subf %198, %197 : vector<1x256xf32>
    %200 = arith.mulf %199, %181 : vector<1x256xf32>
    %201 = arith.addf %147, %182 : vector<4x256xf32>
    %cst_80 = arith.constant 5.000000e-01 : f32
    %202 = vector.broadcast %cst_80 : f32 to vector<4x256xf32>
    %203 = arith.mulf %201, %202 : vector<4x256xf32>
    %204 = vector.broadcast %200 : vector<1x256xf32> to vector<4x256xf32>
    %205 = arith.mulf %204, %203 : vector<4x256xf32>
    %206 = arith.addf %171, %205 : vector<4x256xf32>
    %207 = arith.mulf %200, %188 : vector<1x256xf32>
    %208 = arith.addf %173, %207 : vector<1x256xf32>
    %209 = arith.addf %174, %200 : vector<1x256xf32>
    %210 = arith.minimumf %175, %188 : vector<1x256xf32>
    %211 = arith.maximumf %176, %188 : vector<1x256xf32>
    %cst_81 = arith.constant 1.000000e+00 : f32
    %212 = vector.broadcast %cst_81 : f32 to vector<1x256xf32>
    %213 = arith.subf %212, %199 : vector<1x256xf32>
    %cst_82 = arith.constant 1.000000e-10 : f32
    %214 = vector.broadcast %cst_82 : f32 to vector<1x256xf32>
    %215 = arith.addf %213, %214 : vector<1x256xf32>
    %216 = arith.mulf %181, %215 : vector<1x256xf32>
    %c28 = arith.constant 28 : index
    %c0_83 = arith.constant 0 : index
    %217 = vector.load %arg1[%c28, %c0_83] : memref<32x256xf32, #tpu.memory_space<vmem>>, vector<4x256xf32>
    %c7 = arith.constant 7 : index
    %c0_84 = arith.constant 0 : index
    %218 = vector.load %arg3[%c7, %c0_84] : memref<8x256xf32, #tpu.memory_space<vmem>>, vector<1x256xf32>
    %c7_85 = arith.constant 7 : index
    %c0_86 = arith.constant 0 : index
    %219 = vector.load %arg2[%c7_85, %c0_86] : memref<8x256xf32, #tpu.memory_space<vmem>>, vector<1x256xf32>
    %220 = arith.subf %218, %183 : vector<1x256xf32>
    %221 = arith.addf %183, %218 : vector<1x256xf32>
    %cst_87 = arith.constant 5.000000e-01 : f32
    %222 = vector.broadcast %cst_87 : f32 to vector<1x256xf32>
    %223 = arith.mulf %221, %222 : vector<1x256xf32>
    %224 = arith.addf %184, %219 : vector<1x256xf32>
    %cst_88 = arith.constant 5.000000e-01 : f32
    %225 = vector.broadcast %cst_88 : f32 to vector<1x256xf32>
    %226 = arith.mulf %224, %225 : vector<1x256xf32>
    %cst_89 = arith.constant 0.000000e+00 : f32
    %227 = vector.broadcast %cst_89 : f32 to vector<1x256xf32>
    %228 = arith.maximumf %226, %227 : vector<1x256xf32>
    %cst_90 = arith.constant 0.000000e+00 : f32
    %229 = vector.broadcast %cst_90 : f32 to vector<1x256xf32>
    %230 = arith.subf %229, %220 : vector<1x256xf32>
    %231 = arith.mulf %230, %228 : vector<1x256xf32>
    %232 = math.exp %231 : vector<1x256xf32>
    %cst_91 = arith.constant 1.000000e+00 : f32
    %233 = vector.broadcast %cst_91 : f32 to vector<1x256xf32>
    %234 = arith.subf %233, %232 : vector<1x256xf32>
    %235 = arith.mulf %234, %216 : vector<1x256xf32>
    %236 = tpu.concatenate %165, %200, %235 in 0 : vector<1x256xf32>, vector<1x256xf32>, vector<1x256xf32> -> vector<3x256xf32>
    %c8_92 = arith.constant 8 : index
    %c0_93 = arith.constant 0 : index
    %237 = vector.load %arg4[%c8_92, %c0_93] : memref<15x256xf32, #tpu.memory_space<vmem>>, vector<3x256xf32>
    tpu.vector_store %arg4[%c8_92, %c0_93], %236 {strides = array<i32>} : memref<15x256xf32, #tpu.memory_space<vmem>>, vector<3x256xf32>,
    %238 = arith.addf %182, %217 : vector<4x256xf32>
    %cst_94 = arith.constant 5.000000e-01 : f32
    %239 = vector.broadcast %cst_94 : f32 to vector<4x256xf32>
    %240 = arith.mulf %238, %239 : vector<4x256xf32>
    %241 = vector.broadcast %235 : vector<1x256xf32> to vector<4x256xf32>
    %242 = arith.mulf %241, %240 : vector<4x256xf32>
    %243 = arith.addf %206, %242 : vector<4x256xf32>
    %244 = arith.mulf %235, %223 : vector<1x256xf32>
    %245 = arith.addf %208, %244 : vector<1x256xf32>
    %246 = arith.addf %209, %235 : vector<1x256xf32>
    %247 = arith.minimumf %210, %223 : vector<1x256xf32>
    %248 = arith.maximumf %211, %223 : vector<1x256xf32>
    %c12_95 = arith.constant 12 : index
    %c0_96 = arith.constant 0 : index
    %249 = vector.load %arg4[%c12_95, %c0_96] : memref<15x256xf32, #tpu.memory_space<vmem>>, vector<1x256xf32>
    tpu.vector_store %arg4[%c12_95, %c0_96], %216 {strides = array<i32>} : memref<15x256xf32, #tpu.memory_space<vmem>>, vector<1x256xf32>,
    %cst_97 = arith.constant 2.000000e+00 : f32
    %250 = vector.broadcast %cst_97 : f32 to vector<4x256xf32>
    %251 = arith.mulf %243, %250 : vector<4x256xf32>
    %cst_98 = arith.constant 1.000000e+00 : f32
    %252 = vector.broadcast %cst_98 : f32 to vector<4x256xf32>
    %253 = arith.subf %251, %252 : vector<4x256xf32>
    %c0_99 = arith.constant 0 : index
    %c0_100 = arith.constant 0 : index
    %254 = vector.load %arg4[%c0_99, %c0_100] : memref<15x256xf32, #tpu.memory_space<vmem>>, vector<4x256xf32>
    tpu.vector_store %arg4[%c0_99, %c0_100], %253 {strides = array<i32>} : memref<15x256xf32, #tpu.memory_space<vmem>>, vector<4x256xf32>,
    %255 = arith.divf %245, %246 : vector<1x256xf32>
    %256 = arith.cmpf one, %255, %255 : vector<1x256xf32>
    %cst_101 = arith.constant 0x7F800000 : f32
    %257 = vector.broadcast %cst_101 : f32 to vector<1x256xf32>
    %258 = arith.select %256, %257, %255 : vector<1x256xi1>, vector<1x256xf32>
    %c11 = arith.constant 11 : index
    %c0_102 = arith.constant 0 : index
    %259 = vector.load %arg4[%c11, %c0_102] : memref<15x256xf32, #tpu.memory_space<vmem>>, vector<1x256xf32>
    tpu.vector_store %arg4[%c11, %c0_102], %258 {strides = array<i32>} : memref<15x256xf32, #tpu.memory_space<vmem>>, vector<1x256xf32>,
    %c13 = arith.constant 13 : index
    %c0_103 = arith.constant 0 : index
    %260 = vector.load %arg4[%c13, %c0_103] : memref<15x256xf32, #tpu.memory_space<vmem>>, vector<1x256xf32>
    tpu.vector_store %arg4[%c13, %c0_103], %247 {strides = array<i32>} : memref<15x256xf32, #tpu.memory_space<vmem>>, vector<1x256xf32>,
    %c14 = arith.constant 14 : index
    %c0_104 = arith.constant 0 : index
    %261 = vector.load %arg4[%c14, %c0_104] : memref<15x256xf32, #tpu.memory_space<vmem>>, vector<1x256xf32>
    tpu.vector_store %arg4[%c14, %c0_104], %248 {strides = array<i32>} : memref<15x256xf32, #tpu.memory_space<vmem>>, vector<1x256xf32>,
    return
  }
  func.func @transform_0(%arg0: i32) -> (i32, i32) {
    %c0_i32 = arith.constant 0 : i32
    %c0_i32_0 = arith.constant 0 : i32
    return %c0_i32, %arg0 : i32, i32
  }
  func.func @transform_1(%arg0: i32) -> (i32, i32) {
    %c0_i32 = arith.constant 0 : i32
    %c0_i32_0 = arith.constant 0 : i32
    return %c0_i32, %arg0 : i32, i32
  }
  func.func @transform_2(%arg0: i32) -> (i32, i32) {
    %c0_i32 = arith.constant 0 : i32
    %c0_i32_0 = arith.constant 0 : i32
    return %c0_i32, %arg0 : i32, i32
  }
  func.func @transform_3(%arg0: i32) -> (i32, i32) {
    %c0_i32 = arith.constant 0 : i32
    %c0_i32_0 = arith.constant 0 : i32
    return %c0_i32, %arg0 : i32, i32
  }
}

</mosaic_0001>

<bundles_post_ra>
// kernel: tpu_custom_call.1
= control target key start
LH: loop header
LB: loop body
LE: loop exit
PB: predicated region body
PF: predicated region fallthrough
CT: control target
= control target key end

     0   :  { %s1574_s0 = inlined_call_operand.hbm [shape: f32[32,768], index: 0, kind: input, shape index: {}]   ;;  %s1575_s1 = inlined_call_operand.hbm [shape: f32[8,768], index: 1, kind: input, shape index: {}]   ;;  %s1576_s2 = inlined_call_operand.hbm [shape: f32[8,768], index: 2, kind: input, shape index: {}]   ;;  %s1577_s3 = inlined_call_operand.hbm [shape: f32[15,768], index: 3, kind: output, shape index: {}]  }
   0x1   :  { %1582 = sst [smem:[#allocation13_spill]] %s1574_s0 }
   0x2   :  { %1583 = sst [smem:[#allocation14_spill]] %s1575_s1 }
   0x3   :  { %8 = vsyncpa [#allocation3], 0 }
   0x4   :  { %10 = vsyncpa [#allocation3 + $0x1], 0 }
   0x5   :  { %11 = vsyncpa [#allocation6], 0 }
   0x6   :  { %13 = vsyncpa [#allocation6 + $0x1], 0 }
   0x7   :  { %14 = vsyncpa [#allocation4], 0 }
   0x8   :  { %16 = vsyncpa [#allocation4 + $0x1], 0  ;;  %s1133_s12 = smov 0   ;;  %s1135_s13 = smov 0  }
   0x9   :  { %s1137_s14 = smov 0   ;;  %s1139_s15 = smov 0  }
   0xa LB: > { %s1154_s16 = sadd.s32 4294967295, %s1101_s15   ;;  %s817_s17 = sadd.s32 4294967294, %s1101_s15   ;;  %s1101_s15 = sphi %s1139_s15, %s1608_s15   ;;  %s1097_s14 = sphi %s1137_s14, %s1607_s14   ;;  %s1093_s13 = sphi %s1135_s13, %s1606_s13   ;;  %s1089_s12 = sphi %s1133_s12, %s1605_s12  }
   0xb   : > { %s1158_s18 = sadd.s32 1, %s1101_s15   ;;  %s29_s19 = sadd.s32 1, %s1097_s14 }
   0xc   : > { %s26_s20 = ssub.s32 %s1101_s15, %s1158_s18  ;;  %p36_p0 = scmp.ne.s32.totalorder %s1097_s14, %s1093_s13 }
   0xd   : > { %p27_p1 = scmp.eq.s32.totalorder %s26_s20, 0  ;;  %p37_p2 = scmp.eq.s32.totalorder %s1101_s15, 0 }
   0xe   : > { %p42_p3 = scmp.ne.s32.totalorder %s1093_s13, %s1089_s12  ;;  %p43_p4 = scmp.eq.s32.totalorder %s1154_s16, 0 }
   0xf   : > { %s1170_s21 = scalar_select %p27_p1, %s1097_s14, %s29_s19  }
  0x10   : > { %p1172_p5 = por %p37_p2, %p36_p0  ;;  %p1176_p6 = por %p43_p4, %p42_p3 }
  0x11   : > { %1584 = sst [smem:[#allocation12_spill]] %s1170_s21  ;;  %p118_p7 = scmp.eq.s32.totalorder %s1154_s16, 2 }
  0x12   : > { %s1586_s23 = scalar_select %p1176_p6, 1, 0 }
  0x13   : > { %p124_p8 = scmp.eq.s32.totalorder %s817_s17, 2  ;;  %p885_p9 = scmp.lt.s32.totalorder %s1101_s15, 3 }
  0x14   : > { %p1182_p10 = por %p118_p7, %p36_p0  ;;  %s1191_s26 = sand.u32 1, %s1097_s14  }
  0x15   : > { %p1186_p11 = por %p124_p8, %p42_p3  ;;  %s1194_s27 = sshll.u32 %s1101_s15, 8 }
  0x16   : > { %s1587_s24 = scalar_select %p1182_p10, 1, 0 }
  0x17   : > { %s1588_s25 = scalar_select %p1186_p11, 1, 0 }
  0x18   : > { %s820_s28 = sshll.u32 %s1191_s26, 6  ;;  %s1589_s0 = sld [smem:[#allocation13_spill]] }
  0x19   : > { %s148_s5 = scalar_lea.vmem [#allocation2], %s820_s28  ;;  %p1205_p12 = pnand %p885_p9, %p1172_p5 }
  0x1a   : > { %s155_s6 = sshll.u32 %s148_s5, 4  ;;  %s165_s8 = sand.u32 1, %s1101_s15   ;;  %s1209_s6 = int_to_ptr.vmem [resolvable:$true] %s155_s6 }
  0x1b   : > { %s1590_s7 = scalar_select %p1205_p12, 1, 0 }
  0x1c   : > { %s1580_s9 = sshll.u32 %s1191_s26, 4  ;;  %s1591_s1 = sld [smem:[#allocation14_spill]] }
  0x1d   : > { %s169_s19 = scalar_lea.vmem [#allocation5], %s1580_s9  ;;  %s1225_s22 = scalar_lea.sflag [#allocation6], %s165_s8 }
  0x1e   : > { %s1201_s4 = scalar_lea.hbm %s1589_s0, %s1194_s27  ;;  %s177_s20 = sshll.u32 %s169_s19, 4  ;;  %s1222_s20 = int_to_ptr.vmem [resolvable:$true] %s177_s20 }
  0x1f   : > { %p1231_p2 = pneg %p1205_p12 }
  0x22   : > { %s1217_s17 = scalar_lea.hbm %s1591_s1, %s1194_s27  ;;  %s946_s10 = scalar_lea.hbm %s1591_s1, 768 }
  0x23   : > { %s941_s28 = scalar_lea.hbm %s1217_s17, 256  ;;  %p947_p5 = scmp.lt.u32.totalorder %s1217_s17, %s1591_s1 }
  0x24   : > { %p942_p1 = scmp.ne.s32.totalorder %s1217_s17, %s941_s28  ;;  %p948_p7 = scmp.lt.u32.totalorder %s946_s10, %s941_s28 }
  0x25   : > { %p950_p9 = scmp.lt.u32.totalorder %s941_s28, %s1217_s17 }
  0x26   : > { %p944_p3 = pnand %p1231_p2, %p942_p1  ;;  %p949_p8 = por %p948_p7, %p947_p5 }
  0x28   : > { %p945_p4 = pneg %p944_p3  ;;  %p951_p13 = por %p950_p9, %p949_p8 }
  0x2a   : > { %p952_p0 = pnand %p951_p13, %p945_p4 }
  0x2c   : > { %955 = shalt.err (!%p952_p0)
}
  0x2d   : > { %s956_s8 = scalar_lea.vmem %s1222_s20, 256  ;;  %s1103_s30 = smov [#allocation5]  }
  0x2e   : > { %p957_p1 = scmp.ne.s32.totalorder %s1222_s20, %s956_s8  ;;  %s961_s5 = sshll.u32 %s1103_s30, 4  ;;  %s962_s5 = int_to_ptr.vmem [resolvable:$false] %s961_s5 }
  0x2f   : > { %s963_s11 = scalar_lea.vmem %s962_s5, 512  ;;  %p964_p10 = scmp.lt.s32.totalorder %s1222_s20, %s962_s5 }
  0x30   : > { %p959_p3 = pnand %p957_p1, %p1231_p2  ;;  %p965_p6 = scmp.lt.s32.totalorder %s963_s11, %s956_s8 }
  0x32   : > { %p960_p11 = pneg %p959_p3  ;;  %p966_p5 = por %p965_p6, %p964_p10 }
  0x34   : > { %p967_p7 = pnand %p966_p5, %p960_p11 }
  0x36   : > { %970 = shalt.err (!%p967_p7)
}
  0x37   : > { %877 = dma.hbm_to_vmem [thread:$0]  (!%p1205_p12), %s1217_s17, 256, %s1222_s20, %s1225_s22  }
  0x38   : > { %p1593_p13 = scmp.lt.s32.totalorder %s1101_s15, 4  ;;  %p1594_p0 = scmp.ge.s32.totalorder %s1101_s15, 1 }
  0x39   : > { %s145_s10 = scalar_lea.sflag [#allocation3], %s1191_s26  ;;  %s971_s19 = scalar_lea.hbm %s1201_s4, 1024 }
  0x3a   : > { %p1259_p4 = pnand %p1594_p0, %p1593_p13  ;;  %p972_p6 = scmp.ne.s32.totalorder %s1201_s4, %s971_s19 }
  0x3b   : > { %s976_s5 = scalar_lea.hbm %s1589_s0, 3072  ;;  %p977_p8 = scmp.lt.u32.totalorder %s1201_s4, %s1589_s0 }
  0x3c   : > { %s1595_s28 = scalar_select %p1259_p4, 1, 0 }
  0x3d   : > { %p974_p10 = pnand %p972_p6, %p1231_p2  ;;  %p978_p9 = scmp.lt.u32.totalorder %s976_s5, %s971_s19 }
  0x3e   : > { %p980_p3 = scmp.lt.u32.totalorder %s971_s19, %s1201_s4 }
  0x3f   : > { %p975_p11 = pneg %p974_p10  ;;  %p979_p1 = por %p978_p9, %p977_p8 }
  0x41   : > { %p981_p5 = por %p980_p3, %p979_p1 }
  0x43   : > { %p982_p7 = pnand %p981_p5, %p975_p11 }
  0x45   : > { %985 = shalt.err (!%p982_p7)
}
  0x46   : > { %s986_s17 = scalar_lea.vmem %s1209_s6, 1024  ;;  %s1104_s20 = smov [#allocation2]  }
  0x47   : > { %p987_p13 = scmp.ne.s32.totalorder %s1209_s6, %s986_s17  ;;  %s991_s8 = sshll.u32 %s1104_s20, 4  ;;  %s992_s8 = int_to_ptr.vmem [resolvable:$false] %s991_s8 }
  0x48   : > { %s993_s9 = scalar_lea.vmem %s992_s8, 2048  ;;  %p994_p10 = scmp.lt.s32.totalorder %s1209_s6, %s992_s8 }
  0x49   : > { %p989_p0 = pnand %p987_p13, %p1231_p2  ;;  %p995_p4 = scmp.lt.s32.totalorder %s993_s9, %s986_s17 }
  0x4b   : > { %p990_p6 = pneg %p989_p0  ;;  %p996_p8 = por %p995_p4, %p994_p10 }
  0x4d   : > { %p997_p9 = pnand %p996_p8, %p990_p6 }
  0x4f   : > { %1000 = shalt.err (!%p997_p9)
}
  0x50   : > { %s1105_s19 = smov 768   ;;  %s1106_s30 = smov 256  }
  0x51   : > { %s1107_s5 = smov 16   ;;  %s1291_s17 = scalar_lea.hbm %s1576_s2, %s1194_s27 }
  0x52   : > { %874 = dma.hbm_to_vmem [thread:$0]  (!%p1205_p12), %s1201_s4, 1024, %s1209_s6, %s145_s10, %s1105_s19, %s1106_s30, %s1107_s5  }
  0x53   : > { %s1596_s8 = sshll.u32 %s1191_s26, 4  ;;  %s1001_s1 = scalar_lea.hbm %s1291_s17, 256 }
  0x54   : > { %s188_s9 = scalar_lea.vmem [#allocation7], %s1596_s8  ;;  %p1002_p4 = scmp.ne.s32.totalorder %s1291_s17, %s1001_s1 }
  0x55   : > { %s196_s0 = sshll.u32 %s188_s9, 4  ;;  %s1006_s6 = scalar_lea.hbm %s1576_s2, 768  ;;  %s197_s0 = int_to_ptr.vmem [resolvable:$true] %s196_s0 }
  0x56   : > { %p1004_p11 = pnand %p1002_p4, %p1231_p2  ;;  %p1007_p3 = scmp.lt.u32.totalorder %s1291_s17, %s1576_s2 }
  0x57   : > { %p1008_p5 = scmp.lt.u32.totalorder %s1006_s6, %s1001_s1  ;;  %p1010_p13 = scmp.lt.u32.totalorder %s1001_s1, %s1291_s17 }
  0x58   : > { %p1005_p1 = pneg %p1004_p11 }
  0x59   : > { %p1009_p7 = por %p1008_p5, %p1007_p3 }
  0x5b   : > { %p1011_p0 = por %p1010_p13, %p1009_p7 }
  0x5d   : > { %p1012_p6 = pnand %p1011_p0, %p1005_p1 }
  0x5f   : > { %1015 = shalt.err (!%p1012_p6)
}
  0x60   : > { %s1016_s26 = scalar_lea.vmem %s197_s0, 256  ;;  %s1108_s19 = smov [#allocation7]  }
  0x61   : > { %p1017_p10 = scmp.ne.s32.totalorder %s197_s0, %s1016_s26  ;;  %s1021_s30 = sshll.u32 %s1108_s19, 4  ;;  %s1022_s30 = int_to_ptr.vmem [resolvable:$false] %s1021_s30 }
  0x62   : > { %s1023_s21 = scalar_lea.vmem %s1022_s30, 512  ;;  %p1024_p4 = scmp.lt.s32.totalorder %s197_s0, %s1022_s30 }
  0x63   : > { %p1019_p8 = pnand %p1017_p10, %p1231_p2  ;;  %p1025_p11 = scmp.lt.s32.totalorder %s1023_s21, %s1016_s26 }
  0x65   : > { %p1020_p9 = pneg %p1019_p8  ;;  %p1026_p12 = por %p1025_p11, %p1024_p4 }
  0x67   : > { %p1027_p3 = pnand %p1026_p12, %p1020_p9 }
  0x69   : > { %1030 = shalt.err (!%p1027_p3)
}
  0x6a   : > { %p1597_p5 = scmp.ne.s32.totalorder %s1590_s7, 0  ;;  %p1598_p1 = scmp.ne.s32.totalorder %s1595_s28, 0 }
  0x6b   : > { %s1316_s1 = sand.u32 (!%p1598_p1), 1, %s1093_s13   ;;  %p1599_p12 = scmp.ne.s32.totalorder (!%p1598_p1), %s1586_s23, 0 }
  0x6c   : > { %880 = dma.hbm_to_vmem [thread:$0]  (!%p1597_p5), %s1291_s17, 256, %s197_s0, %s1225_s22  }
  0x6d   : > { %205 = sbr.rel (%p1598_p1) target bundleno = 209 (0xd1), region = 32  ;;  %s830_s29 = sshll.u32 (!%p1598_p1), %s1316_s1, 6 }
  0x6e   : > { %s208_s5 = scalar_lea.sflag (!%p1598_p1), [#allocation3], %s1316_s1  ;;  %s1320_s11 = scalar_lea.vmem (!%p1598_p1), [#allocation2], %s830_s29 }
  0x74   : > { %1076 = dma.done.wait (%p1599_p12), %s208_s5, 1024  }
  0x75   : > { %1078 = vsyncadd (%p1599_p12), %s208_s5, 4294966272  ;;  %s216_s0 = sand.u32 1, %s1154_s16   ;;  %s831_s7 = sshll.u32 %s1316_s1, 4 }
  0x76   : > { %s217_s22 = scalar_lea.sflag [#allocation6], %s216_s0  ;;  %s1328_s28 = scalar_lea.vmem [#allocation5], %s831_s7 }
  0x77   : > { %1080 = dma.done.wait (%p1599_p12), %s217_s22, 512  }
  0x78   : > { %1082 = vsyncadd (%p1599_p12), %s217_s22, 4294966784  ;;  %v298_v0 = vlaneseq  ;;  %v266_v2 = vld [vmem:[%s1320_s11] sm:$0xf]  ;;  %s1336_s20 = scalar_lea.vmem [#allocation7], %s831_s7  ;;  %v270_v6 = vld [vmem:[%s1320_s11] sm:$0xf0] }
  0x79   : > { %v268_v3 = vld [vmem:[%s1336_s20] ss:$8 sm:$0x3]  ;;  %v1346_v8 = vld [vmem:[%s1336_s20 + $0x1] ss:$8 sm:$0x3] }
  0x7a   : > { %v299_v1 = vshrl.u32 %v298_v0, 7  ;;  %v269_v5 = vld [vmem:[%s1328_s28] ss:$8 sm:$0x3]  ;;  %v276_v10 = vsub.f32 %v1346_v8, %v268_v3  ;;  %v289_v12 = vrot.slane %v270_v6, 4  ;;  %v277_v19 = vadd.f32 %v1346_v8, %v268_v3  ;;  %s833_s23 = sshll.u32 %s1316_s1, 5 }
  0x7b   : > { %v835_v9 = vld [vmem:[%s1328_s28 + $0x1] ss:$8 sm:$0x3]  ;;  %v1352_v14 = vld [vmem:[%s1336_s20 + $0x2] ss:$8 sm:$0x3] }
  0x7c   : > { %v1339_v4 = vsub.s32 0, %v299_v1  ;;  %v1343_v7 = vsub.s32 1, %v299_v1  ;;  %v279_v11 = vadd.f32 %v835_v9, %v269_v5  ;;  %v317_v13 = vld [vmem:[%s1320_s11 + $0x10] sm:$0xf]  ;;  %v323_v16 = vsub.f32 %v1352_v14, %v1346_v8  ;;  %v374_v18 = vld [vmem:[%s1320_s11 + $0x10] sm:$0xf0] }
  0x7d   : > { %v837_v15 = vld [vmem:[%s1328_s28 + $0x2] ss:$8 sm:$0x3]  ;;  %v337_v17 = vrot.slane %v317_v13, 4  ;;  %v282_v21 = vsub.f32 0.0, %v276_v10  ;;  %v293_v22 = vadd.f32 %v289_v12, %v266_v2  ;;  %v394_v29 = vrot.slane %v374_v18, 4 }
  0x7e   : > { %v280_v20 = vmul.f32 0.5, %v279_v11  ;;  %v326_v23 = vadd.f32 %v837_v15, %v835_v9  ;;  %v1360_v24 = vld [vmem:[%s1336_s20 + $0x3] ss:$8 sm:$0x3]  ;;  %v329_v25 = vsub.f32 0.0, %v323_v16  ;;  %v1380_v50 = vmul.f32 0.5, %v277_v19 }
  0x7f   : > { %v341_v26 = vadd.f32 %v337_v17, %v270_v6  ;;  %v839_v27 = vld [vmem:[%s1328_s28 + $0x3] ss:$8 sm:$0x3]  ;;  %v380_v28 = vsub.f32 %v1360_v24, %v1352_v14  ;;  %v1365_v31 = vmul.f32 0.5, %v293_v22  ;;  %v398_v37 = vadd.f32 %v394_v29, %v317_v13  ;;  %v271_v49 = vld [vmem:[%s1320_s11 + $0x8] sm:$0xf0] }
  0x80   : > { %v281_v30 = vmax.f32 %v280_v20, 0.0  ;;  %v327_v32 = vmul.f32 0.5, %v326_v23  ;;  %v383_v33 = vadd.f32 %v839_v27, %v837_v15  ;;  %v425_v34 = vld [vmem:[%s1320_s11 + $0x20] sm:$0xf]  ;;  %v267_v48 = vld [vmem:[%s1320_s11 + $0x8] sm:$0xf]  ;;  %v1397_v20 = vadd.f32 %v1352_v14, %v1346_v8 }
  0x81   : > { %v1368_v35 = vmul.f32 0.5, %v341_v26  ;;  %v386_v36 = vsub.f32 0.0, %v380_v28  ;;  %v1371_v38 = vld [vmem:[%s1336_s20 + $0x4] ss:$8 sm:$0x3]  ;;  %v473_v39 = vrot.slane %v425_v34, 4 }
  0x82   : > { %v283_v40 = vmul.f32 %v282_v21, %v281_v30  ;;  %v328_v41 = vmax.f32 %v327_v32, 0.0  ;;  %v384_v42 = vmul.f32 0.5, %v383_v33  ;;  %v841_v43 = vld [vmem:[%s1328_s28 + $0x4] ss:$8 sm:$0x3]  ;;  %v431_v44 = vsub.f32 %v1371_v38, %v1360_v24  ;;  %s1474_s17 = scalar_lea.vmem [#allocation8], %s833_s23 }
  0x83   : > { %v1376_v45 = vmul.f32 0.5, %v398_v37  ;;  %v434_v46 = vadd.f32 %v841_v43, %v839_v27  ;;  %v477_v47 = vadd.f32 %v473_v39, %v374_v18  ;;  %v318_v55 = vld [vmem:[%s1320_s11 + $0x18] sm:$0xf]  ;;  %v290_v58 = vrot.slane %v271_v49, 4  ;;  %v375_v60 = vld [vmem:[%s1320_s11 + $0x18] sm:$0xf0] }
  0x84   : > { %v284_v51 = vmul.f32 1.442695, %v283_v40  ;;  %v330_v52 = vmul.f32 %v329_v25, %v328_v41  ;;  %v385_v53 = vmax.f32 %v384_v42, 0.0  ;;  %v437_v54 = vsub.f32 0.0, %v431_v44  ;;  %v426_v1 = vld [vmem:[%s1320_s11 + $0x28] sm:$0xf] }
  0x85   : > { %v435_v56 = vmul.f32 0.5, %v434_v46  ;;  %v1383_v57 = vmul.f32 0.5, %v477_v47  ;;  %v338_v59 = vrot.slane %v318_v55, 4  ;;  %v395_v63 = vrot.slane %v375_v60, 4  ;;  %v499_v9 = vld [vmem:[%s1320_s11 + $0x20] sm:$0xf0] }
  0x86   : > { %925 = vpow2.f32 %v284_v51  ;;  %v331_v61 = vmul.f32 1.442695, %v330_v52  ;;  %v387_v62 = vmul.f32 %v386_v36, %v385_v53  ;;  %v294_v3 = vadd.f32 %v290_v58, %v267_v48  ;;  %v1389_v12 = vld [vmem:[%s1336_s20 + $0x5] ss:$8 sm:$0x3]  ;;  %s701_s8 = sshll.u32 %s1474_s17, 4  ;;  %s1523_s8 = int_to_ptr.vmem [resolvable:$true] %s701_s8 }
  0x87   : > { %v436_v2 = vmax.f32 %v435_v56, 0.0  ;;  %v342_v5 = vadd.f32 %v338_v59, %v271_v49  ;;  %v474_v6 = vrot.slane %v426_v1, 4  ;;  %v399_v11 = vadd.f32 %v395_v63, %v318_v55  ;;  %v843_v18 = vld [vmem:[%s1328_s28 + $0x5] ss:$8 sm:$0x3]  ;;  %s862_s9 = sshll.u32 %s1154_s16, 8 }
  0x88   : > { %927 = vpow2.f32 %v331_v61  ;;  %v388_v10 = vmul.f32 1.442695, %v387_v62  ;;  %v519_v13 = vrot.slane %v499_v9, 4  ;;  %v1391_v16 = vmul.f32 0.5, %v294_v3  ;;  %v500_v19 = vld [vmem:[%s1320_s11 + $0x28] sm:$0xf0]  ;;  %s1528_s10 = scalar_lea.hbm %s1577_s3, %s862_s9 }
  0x89   : > { %v438_v15 = vmul.f32 %v437_v54, %v436_v2  ;;  %v478_v17 = vadd.f32 %v474_v6, %v375_v60  ;;  %v1399_v21 = vmul.f32 0.5, %v342_v5  ;;  %v505_v22 = vsub.f32 %v1389_v12, %v1371_v38  ;;  %v1404_v25 = vld [vmem:[%s1336_s20 + $0x6] ss:$8 sm:$0x3]  ;;  %v550_v26 = vld [vmem:[%s1320_s11 + $0x30] sm:$0xf] }
  0x8a   : > { %929 = vpow2.f32 %v388_v10  ;;  %v508_v23 = vadd.f32 %v843_v18, %v841_v43  ;;  %v1407_v28 = vmul.f32 0.5, %v399_v11  ;;  %v523_v29 = vadd.f32 %v519_v13, %v425_v34  ;;  %v845_v30 = vld [vmem:[%s1328_s28 + $0x6] ss:$8 sm:$0x3]  ;;  %v551_v49 = vld [vmem:[%s1320_s11 + $0x38] sm:$0xf] }
  0x8b   : > { %v439_v27 = vmul.f32 1.442695, %v438_v15  ;;  %v556_v8 = vsub.f32 %v1404_v25, %v1389_v12  ;;  %v511_v33 = vsub.f32 0.0, %v505_v22  ;;  %v559_v36 = vadd.f32 %v845_v30, %v843_v18  ;;  %v1413_v37 = vld [vmem:[%s1336_s20 + $0x7] ss:$8 sm:$0x3] }
  0x8c   : > { %v509_v32 = vmul.f32 0.5, %v508_v23  ;;  %v520_v39 = vrot.slane %v500_v19, 4  ;;  %v1415_v40 = vmul.f32 0.5, %v478_v17  ;;  %v847_v42 = vld [vmem:[%s1328_s28 + $0x7] ss:$8 sm:$0x3]  ;;  %v613_v34 = vsub.f32 %v1413_v37, %v1404_v25 }
  0x8d   : > { %931 = vpow2.f32 %v439_v27  ;;  %v562_v41 = vsub.f32 0.0, %v556_v8  ;;  %v560_v44 = vmul.f32 0.5, %v559_v36  ;;  %v616_v46 = vadd.f32 %v847_v42, %v845_v30  ;;  %v607_v48 = vld [vmem:[%s1320_s11 + $0x30] sm:$0xf0]  ;;  %s688_s16 = scalar_lea.sflag [#allocation4], %s1316_s1  ;;  %s1031_s27 = scalar_lea.vmem %s1523_s8, 512 }
  0x8e   : > { %v510_v43 = vmax.f32 %v509_v32, 0.0  ;;  %v524_v47 = vadd.f32 %v520_v39, %v426_v1  ;;  %v1422_v51 = vmul.f32 0.5, %v523_v29  ;;  %v570_v52 = vrot.slane %v550_v26, 4  ;;  %v608_v1 = vld [vmem:[%s1320_s11 + $0x38] sm:$0xf0]  ;;  %p1032_p2 = scmp.ne.s32.totalorder %s1523_s8, %s1031_s27  ;;  %p1602_p7 = scmp.ne.s32.totalorder %s1587_s24, 0 }
  0x8f   : > { %v644_v53 = vrot.slane %v607_v48, 4  ;;  %v571_v54 = vrot.slane %v551_v49, 4  ;;  %vm454_vm0 = vcmask 1040384   ;;  %v561_v58 = vmax.f32 %v560_v44, 0.0  ;;  %s1109_s26 = smov [#allocation8]  }
  0x90   : > { %v926_v55 = vpop.eup %925  ;;  %v512_v56 = vmul.f32 %v511_v33, %v510_v43  ;;  %v617_v59 = vmul.f32 0.5, %v616_v46  ;;  %v619_v60 = vsub.f32 0.0, %v613_v34  ;;  %v1424_v62 = vmul.f32 0.5, %v524_v47  ;;  %p1033_p13 = pnand %p1032_p2, %p1602_p7  ;;  %s1035_s19 = sshll.u32 %s1109_s26, 4  ;;  %s1036_s19 = int_to_ptr.vmem [resolvable:$false] %s1035_s19 }
  0x91   : > { %v286_v61 = vsub.f32 1.0, %v926_v55  ;;  %v574_v63 = vadd.f32 %v570_v52, %v499_v9  ;;  %v648_v2 = vadd.f32 %v644_v53, %v550_v26  ;;  %v563_v6 = vmul.f32 %v562_v41, %v561_v58  ;;  %s1037_s30 = scalar_lea.vmem %s1036_s19, 1024  ;;  %p1038_p6 = scmp.lt.s32.totalorder %s1523_s8, %s1036_s19 }
  0x92   : > { %v928_v3 = vpop.eup %927  ;;  %v513_v5 = vmul.f32 1.442695, %v512_v56  ;;  %v618_v10 = vmax.f32 %v617_v59, 0.0  ;;  %v575_v11 = vadd.f32 %v571_v54, %v500_v19  ;;  %vm457_vm1 = vcmask 1041408   ;;  %p1034_p0 = pneg %p1033_p13  ;;  %p1039_p10 = scmp.lt.s32.totalorder %s1037_s30, %s1031_s27 }
  0x93   : > { %v301_v13 = vrot.slane %v286_v61, %v1339_v4  ;;  %v315_v15 = vsub.f32 1.0, %v286_v61  ;;  %v333_v17 = vsub.f32 1.0, %v928_v3  ;;  %v305_v18 = vrot.slane %v286_v61, %v1343_v7 }
  0x94   : > { %v930_v22 = vpop.eup %929  ;;  %933 = vpow2.f32 %v513_v5  ;;  %v564_v23 = vmul.f32 1.442695, %v563_v6  ;;  %v620_v27 = vmul.f32 %v619_v60, %v618_v10  ;;  %v645_v29 = vrot.slane %v608_v1, 4  ;;  %p1040_p8 = por %p1039_p10, %p1038_p6 }
  0x95   : > { %v316_v9 = vadd.f32 1e-10, %v315_v15  ;;  %v371_v26 = vsub.f32 1.0, %v333_v17  ;;  %v390_v30 = vsub.f32 1.0, %v930_v22  ;;  %v1429_v8 = vmul.f32 0.5, %v574_v63 }
  0x96   : > { %v308_v32 = vmul.f32 %v301_v13, %v1365_v31  ;;  %vm460_vm2 = vcmask 1042432   ;;  %v309_v19 = vmul.f32 %v305_v18, %v1391_v16  ;;  %935 = vpow2.f32 %v564_v23  ;;  %p1041_p9 = pnand %p1040_p8, %p1034_p0 }
  0x97   : > { %v621_v33 = vmul.f32 1.442695, %v620_v27  ;;  %v932_v36 = vpop.eup %931  ;;  %v334_v39 = vmul.f32 %v333_v17, %v316_v9  ;;  %v372_v41 = vadd.f32 1e-10, %v371_v26  ;;  %v422_v42 = vsub.f32 1.0, %v390_v30 }
  0x98   : > { %v1433_v34 = vmul.f32 0.5, %v648_v2  ;;  %v441_v43 = vsub.f32 1.0, %v932_v36  ;;  %v1435_v44 = vmul.f32 0.5, %v575_v11  ;;  %v1437_v46 = vadd.f32 %v645_v29, %v551_v49 }
  0x99   : > { %937 = vpow2.f32 %v621_v33  ;;  %v349_v47 = vrot.slane %v334_v39, %v1339_v4  ;;  %v373_v31 = vmul.f32 %v372_v41, %v316_v9  ;;  %v423_v48 = vadd.f32 1e-10, %v422_v42 }
  0x9a   : > { %v353_v16 = vrot.slane %v334_v39, %v1343_v7  ;;  %v496_v52 = vsub.f32 1.0, %v441_v43  ;;  %v312_v53 = vmul.f32 %v286_v61, %v1380_v50  ;;  %v1443_v54 = vmul.f32 0.5, %v1397_v20 }
  0x9b   : > { %v368_v55 = vadd.f32 %v334_v39, %v286_v61  ;;  %v356_v56 = vmul.f32 %v349_v47, %v1368_v35  ;;  %v391_v58 = vmul.f32 %v390_v30, %v373_v31  ;;  %v424_v59 = vmul.f32 %v423_v48, %v373_v31 }
  0x9c   : > { %v455_v49 = vsel %vm454_vm0, %v301_v13, %v349_v47  ;;  %v357_v60 = vmul.f32 %v353_v16, %v1399_v21  ;;  %v456_v63 = vsel %vm454_vm0, %v305_v18, %v353_v16  ;;  %v497_v2 = vadd.f32 1e-10, %v496_v52 }
  0x9d   : > { %v366_v1 = vmul.f32 %v334_v39, %v1443_v54  ;;  %v360_v3 = vrot.slane %v356_v56, 4  ;;  %v406_v5 = vrot.slane %v391_v58, %v1339_v4  ;;  %v1451_v6 = vmul.f32 %v441_v43, %v424_v59 }
  0x9e   : > { %v410_v20 = vrot.slane %v391_v58, %v1343_v7  ;;  %v934_v61 = vpop.eup %933  ;;  %v361_v35 = vrot.slane %v357_v60, 4  ;;  %v498_v10 = vmul.f32 %v497_v2, %v424_v59  ;;  %v381_v21 = vadd.f32 %v1360_v24, %v1352_v14 }
  0x9f   : > { %v367_v11 = vadd.f32 %v366_v1, %v312_v53  ;;  %v413_v13 = vmul.f32 %v406_v5, %v1376_v45  ;;  %v447_v15 = vrot.slane %v1451_v6, %v1339_v4  ;;  %v458_v17 = vsel %vm457_vm1, %v455_v49, %v406_v5 }
  0xa0   : > { %v414_v18 = vmul.f32 %v410_v20, %v1407_v28  ;;  %v936_v22 = vpop.eup %935  ;;  %v451_v23 = vrot.slane %v1451_v6, %v1343_v7  ;;  %v459_v27 = vsel %vm457_vm1, %v456_v63, %v410_v20  ;;  %v515_v29 = vsub.f32 1.0, %v934_v61 }
  0xa1   : > { %vm1466_vm3 = vcmp.lt.s32.totalorder %v298_v0, 256  ;;  %v364_v14 = vadd.f32 %v360_v3, %v308_v32  ;;  %v461_v45 = vsel %vm460_vm2, %v458_v17, %v447_v15  ;;  %v481_v26 = vmul.f32 %v1383_v57, %v447_v15 }
  0xa2   : > { %v566_v30 = vsub.f32 1.0, %v936_v22  ;;  %v365_v33 = vadd.f32 %v361_v35, %v309_v19  ;;  %v465_v36 = vrot.slane %v461_v45, 4  ;;  %v462_v39 = vsel %vm460_vm2, %v459_v27, %v451_v23 }
  0xa3   : > { %v938_v28 = vpop.eup %937  ;;  %v482_v41 = vmul.f32 %v1415_v40, %v451_v23  ;;  %v516_v42 = vmul.f32 %v515_v29, %v498_v10  ;;  %v485_v43 = vrot.slane %v481_v26, 4  ;;  %v466_v47 = vrot.slane %v462_v39, 4 }
  0xa4   : > { %v547_v0 = vsub.f32 1.0, %v515_v29  ;;  %v604_v31 = vsub.f32 1.0, %v566_v30  ;;  %469 = vst [vmem:[%s1474_s17] sm:$0xf0] %v465_v36  ;;  %v623_v19 = vsub.f32 1.0, %v938_v28  ;;  %v415_v40 = vadd.f32 %v413_v13, %v364_v14 }
  0xa5   : > { %v486_v32 = vrot.slane %v482_v41, 4  ;;  %v531_v57 = vrot.slane %v516_v42, %v1339_v4  ;;  %v535_v48 = vrot.slane %v516_v42, %v1343_v7  ;;  %470 = vst [vmem:[%s1474_s17 + $0x8] sm:$0xf0] %v466_v47  ;;  %v416_v53 = vadd.f32 %v414_v18, %v365_v33 }
  0xa6   : > { %v548_v16 = vadd.f32 1e-10, %v547_v0  ;;  %v605_v52 = vadd.f32 1e-10, %v604_v31  ;;  %v382_v49 = vmul.f32 0.5, %v381_v21  ;;  %v419_v60 = vadd.f32 %v391_v58, %v368_v55 }
  0xa7   : > { %v538_v56 = vmul.f32 %v531_v57, %v1422_v51  ;;  %v539_v59 = vmul.f32 %v535_v48, %v1424_v62  ;;  %v489_v2 = vadd.f32 %v485_v43, %v415_v40  ;;  %v490_v1 = vadd.f32 %v486_v32, %v416_v53 }
  0xa8   : > { %v549_v63 = vmul.f32 %v548_v16, %v498_v10  ;;  %v432_v3 = vadd.f32 %v1371_v38, %v1360_v24  ;;  %v417_v5 = vmul.f32 %v391_v58, %v382_v49  ;;  %v493_v20 = vadd.f32 %v1451_v6, %v419_v60 }
  0xa9   : > { %v506_v61 = vadd.f32 %v1389_v12, %v1371_v38  ;;  %v557_v51 = vadd.f32 %v1404_v25, %v1389_v12  ;;  %v540_v21 = vadd.f32 %v538_v56, %v489_v2  ;;  %v651_v55 = vmul.f32 0.5, %v1437_v46 }
  0xaa   : > { %v567_v35 = vmul.f32 %v566_v30, %v549_v63  ;;  %v606_v62 = vmul.f32 %v605_v52, %v549_v63  ;;  %v418_v10 = vadd.f32 %v417_v5, %v367_v11  ;;  %v433_v13 = vmul.f32 0.5, %v432_v3 }
  0xab   : > { %v507_v15 = vmul.f32 0.5, %v506_v61  ;;  %v544_v17 = vadd.f32 %v516_v42, %v493_v20  ;;  %v541_v38 = vadd.f32 %v539_v59, %v490_v1  ;;  %v558_v23 = vmul.f32 0.5, %v557_v51 }
  0xac   : > { %v582_v24 = vrot.slane %v567_v35, %v1339_v4  ;;  %v624_v58 = vmul.f32 %v623_v19, %v606_v62  ;;  %v586_v18 = vrot.slane %v567_v35, %v1343_v7  ;;  %848 = vst.msk [vmem:[%s1474_s17 + $0x14] ss:$8 sm:$0x3] %vm1466_vm3, %v606_v62  ;;  %v491_v12 = vmul.f32 %v1451_v6, %v433_v13 }
  0xad   : > { %v542_v22 = vmul.f32 %v516_v42, %v507_v15  ;;  %v601_v46 = vadd.f32 %v567_v35, %v544_v17  ;;  %v614_v33 = vadd.f32 %v1413_v37, %v1404_v25  ;;  %v599_v41 = vmul.f32 %v567_v35, %v558_v23 }
  0xae   : > { %v629_v11 = vrot.slane %v624_v58, %v1339_v4  ;;  %v636_v27 = vsel %vm454_vm0, %v531_v57, %v582_v24  ;;  %v633_v29 = vrot.slane %v624_v58, %v1343_v7  ;;  %v637_v14 = vsel %vm454_vm0, %v535_v48, %v586_v18 }
  0xaf   : > { %v589_v45 = vmul.f32 %v582_v24, %v1429_v8  ;;  %v590_v26 = vmul.f32 %v586_v18, %v1435_v44  ;;  %v492_v30 = vadd.f32 %v491_v12, %v418_v10  ;;  %v658_v42 = vadd.f32 %v624_v58, %v601_v46 }
  0xb0   : > { %v638_v6 = vsel %vm457_vm1, %v636_v27, %v629_v11  ;;  %v639_v28 = vsel %vm457_vm1, %v637_v14, %v633_v29  ;;  %v652_v36 = vmul.f32 %v1433_v34, %v629_v11  ;;  %v653_v39 = vmul.f32 %v651_v55, %v633_v29 }
  0xb1   : > { %640 = vst [vmem:[%s1474_s17 + $0x10] sm:$0x7] %v638_v6  ;;  %641 = vst [vmem:[%s1474_s17 + $0x18] sm:$0x7] %v639_v28  ;;  %v593_v4 = vrot.slane %v589_v45, 4  ;;  %v594_v7 = vrot.slane %v590_v26, 4  ;;  %v369_v8 = vmin.f32 %v1380_v50, %v1443_v54  ;;  %v370_v44 = vmax.f32 %v1380_v50, %v1443_v54 }
  0xb2   : > { %v543_v43 = vadd.f32 %v542_v22, %v492_v30  ;;  %v615_v47 = vmul.f32 0.5, %v614_v33  ;;  %939 = vrcp.f32 %v658_v42 }
  0xb3   : > { %v597_v25 = vadd.f32 %v593_v4, %v540_v21  ;;  %v598_v37 = vadd.f32 %v594_v7, %v541_v38  ;;  %v420_v0 = vmin.f32 %v369_v8, %v382_v49  ;;  %v421_v31 = vmax.f32 %v370_v44, %v382_v49 }
  0xb4   : > { %v600_v52 = vadd.f32 %v599_v41, %v543_v43  ;;  %v656_v50 = vmul.f32 %v624_v58, %v615_v47 }
  0xb5   : > { %v654_v34 = vadd.f32 %v652_v36, %v597_v25  ;;  %v655_v32 = vadd.f32 %v653_v39, %v598_v37  ;;  %v494_v57 = vmin.f32 %v420_v0, %v433_v13  ;;  %v495_v19 = vmax.f32 %v421_v31, %v433_v13 }
  0xb6   : > { %v657_v49 = vadd.f32 %v656_v50, %v600_v52 }
  0xb7   : > { %v668_v48 = vmul.f32 2.0, %v654_v34  ;;  %v669_v16 = vmul.f32 2.0, %v655_v32  ;;  %v545_v54 = vmin.f32 %v494_v57, %v507_v15  ;;  %v546_v40 = vmax.f32 %v495_v19, %v507_v15 }
  0xb9   : > { %v849_v53 = vadd.f32 -1.0, %v668_v48  ;;  %v850_v56 = vadd.f32 -1.0, %v669_v16  ;;  %v602_v59 = vmin.f32 %v545_v54, %v558_v23  ;;  %v603_v60 = vmax.f32 %v546_v40, %v558_v23 }
  0xbb   : > { %672 = vst [vmem:[%s1474_s17] sm:$0xf] %v849_v53  ;;  %673 = vst [vmem:[%s1474_s17 + $0x8] sm:$0xf] %v850_v56  ;;  %v659_v63 = vmin.f32 %v602_v59, %v615_v47  ;;  %v660_v2 = vmax.f32 %v603_v60, %v615_v47 }
  0xbc   : > { %v940_v1 = vpop.eup %939 }
  0xbd   : > { %852 = vst.msk [vmem:[%s1474_s17 + $0x15] ss:$8 sm:$0x3] %vm1466_vm3, %v659_v63  ;;  %853 = vst.msk [vmem:[%s1474_s17 + $0x16] ss:$8 sm:$0x3] %vm1466_vm3, %v660_v2  ;;  %v675_v3 = vmul.f32 %v940_v1, %v657_v49 }
  0xbf   : > { %vm676_vm4 = vcmp.ne.f32.partialorder %v675_v3, %v675_v3 }
  0xc0   : > { %v677_v5 = vsel %vm676_vm4, inf, %v675_v3 }
  0xc1   : > { %851 = vst.msk [vmem:[%s1474_s17 + $0x13] ss:$8 sm:$0x3] %vm1466_vm3, %v677_v5 }
  0xc2   : > { %1044 = shalt.err (!%p1041_p9)
}
  0xc3   : > { %s1045_s21 = scalar_lea.hbm %s1528_s10, 512  ;;  %s1049_s11 = scalar_lea.hbm %s1577_s3, 1536 }
  0xc4   : > { %p1046_p4 = scmp.ne.s32.totalorder %s1528_s10, %s1045_s21  ;;  %p1050_p5 = scmp.lt.u32.totalorder %s1528_s10, %s1577_s3 }
  0xc5   : > { %p1051_p1 = scmp.lt.u32.totalorder %s1049_s11, %s1045_s21  ;;  %p1053_p2 = scmp.lt.u32.totalorder %s1045_s21, %s1528_s10 }
  0xc6   : > { %p1047_p11 = pnand %p1046_p4, %p1602_p7 }
  0xc7   : > { %p1052_p12 = por %p1051_p1, %p1050_p5 }
  0xc8   : > { %p1048_p3 = pneg %p1047_p11 }
  0xc9   : > { %p1054_p13 = por %p1053_p2, %p1052_p12 }
  0xcb   : > { %p1055_p0 = pnand %p1054_p13, %p1048_p3 }
  0xcd   : > { %1058 = shalt.err (!%p1055_p0)
}
  0xce   : > { %s1110_s22 = smov 256   ;;  %s1111_s28 = smov 768  }
  0xcf   : > { %s1112_s20 = smov 16  }
  0xd0   : > { %869 = dma.vmem_to_hbm [thread:$0]  (%p1602_p7), %s1523_s8, 512, %s1528_s10, %s688_s16, %s1110_s22, %s1111_s28, %s1112_s20  }
  0xd1 PF: > { %p886_p6 = scmp.ge.s32.totalorder %s1101_s15, 2  ;;  %s716_s23 = sand.u32 1, %s1089_s12  }
  0xd2   : > { %p1603_p10 = scmp.ne.s32.totalorder %s1588_s25, 0  ;;  %s717_s17 = scalar_lea.sflag [#allocation4], %s716_s23 }
  0xd4   : > { %p882_p8 = pnand %p886_p6, %p1603_p10 }
  0xd6   : > { %1084 = dma.done.wait (!%p882_p8), %s717_s17, 512  }
  0xd7   : > { %1086 = vsyncadd (!%p882_p8), %s717_s17, 4294966784  ;;  %s1604_s9 = sld [smem:[#allocation12_spill]]  ;;  %p19_p9 = scmp.ge.s32.totalorder %s1158_s18, 5  }
  0xd8   : > { %s1605_s12 = smov %s1093_s13  ;;  %s1606_s13 = smov %s1097_s14 }
  0xd9   : > { %s1608_s15 = smov %s1158_s18  ;;  %21 = sbr.rel (!%p19_p9) target bundleno = 10 (0xa), region = 119 }
  0xdd   : > { %s1607_s14 = smov %s1604_s9 }
  0xe0   :  { %722 = vsyncpa [#allocation3], 1 }
  0xe1   :  { %724 = vsyncpa [#allocation3 + $0x1], 1 }
  0xe2   :  { %725 = vsyncpa [#allocation6], 1 }
  0xe3   :  { %727 = vsyncpa [#allocation6 + $0x1], 1 }
  0xe4   :  { %728 = vsyncpa [#allocation4], 1 }
  0xe5   :  { %730 = vsyncpa [#allocation4 + $0x1], 1 }

</bundles_post_ra>
